<compile_context>
chip_gen: v6e
topology: v6e:2x2x1
jax: 0.10.0
libtpu: 0.0.40
codegen_flags: <defaults>
</compile_context>

<pallas_src>
import math

import jax
import jax.numpy as jnp
from jax.experimental import pallas as pl
from jax.experimental.pallas import tpu as pltpu


_DEFAULT_TARGET_BLOCK_BYTES = 4 << 20   # safe block target on any generation
_SAFE_VMEM_CAP = 48 << 20               # always fits under v7x's 64 MiB physical VMEM
_VMEM_LIMIT_FLOOR = 32 << 20            # never below the default scoped limit
_VMEM_HEADROOM = 4 << 20


def _hw_block_params():
    """Generation-aware (target_block_bytes, vmem_limit_cap)."""
    target, cap = _DEFAULT_TARGET_BLOCK_BYTES, _SAFE_VMEM_CAP
    vmem_phys = None
    try:
        vmem_phys = int(pltpu.get_tpu_info().vmem_capacity_bytes)
    except Exception:
        vmem_phys = None
    kind = ""
    try:
        kind = jax.devices()[0].device_kind.lower()
    except Exception:
        kind = ""
    if vmem_phys:
        if vmem_phys <= (64 << 20):
            # v7x-class (64 MiB VMEM/TC, ~3.2 TB/s): 8 MiB blocks halve the
            # relative cost of the ~0.35 us per-step overhead; 2x(8+8) MiB
            # double-buffered + pos still fits well under the 48 MiB cap.
            target = 8 << 20
            cap = min(_SAFE_VMEM_CAP, int(0.75 * vmem_phys))
        elif "v5" in kind:
            # v5e (~820 GB/s): a 4 MiB block step is ~10 us, so the per-step
            # overhead is already <4%; keep 4 MiB blocks, just lift the cap.
            target = 4 << 20
            cap = int(0.75 * vmem_phys)
        else:
            # v6e-class (128 MiB VMEM, ~1.4 TB/s): bigger blocks are free wins.
            target = 8 << 20
            cap = int(0.75 * vmem_phys)
    return target, max(cap, _VMEM_LIMIT_FLOOR)


def _choose_blocks(batch, flat, itemsize, target_bytes):
    """Pick (row_block bb, lane_block fb) for the flattened (batch, flat) slab."""
    # Lane (last) dim: full extent if flat is not a 128-multiple (full-dim rule)
    # or if an 8-row slab fits the byte target; otherwise the largest
    # 128-multiple that does (stores stay lane-dense either way).
    if flat % 128 != 0 or 8 * flat * itemsize <= target_bytes:
        fb = flat
    else:
        fb = max(128, (target_bytes // (8 * itemsize)) // 128 * 128)
    # Row (sublane) dim: as many rows as the byte target allows, respecting the
    # "multiple of 8 or full dim" rule.
    rows = max(1, target_bytes // (fb * itemsize))
    if rows >= batch:
        bb = batch                       # full-dim rule: any size is legal
    elif rows >= 8:
        bb = (rows // 8) * 8             # multiple-of-8 sublane rule
    else:
        bb = min(batch, 8)               # smallest legal tile above the target
    return bb, fb


def _add_pos_kernel(x_ref, pos_ref, o_ref):
    # x_ref: (Bb, Fb) slab of x; pos_ref: (1, Fb) positional row, broadcast over
    # the sublane axis on the VPU; o_ref: (Bb, Fb) in the promoted dtype.
    o_ref[...] = x_ref[...].astype(o_ref.dtype) + pos_ref[...]


def document_position_encode(x, pos_embedding, mask=None):
    """Pallas equivalent of DocumentPositionEncoder.forward(x, mask)."""
    del mask  # unused in the reference forward pass
    batch, seq_len, dim = x.shape
    max_doc_length, pos_dim = pos_embedding.shape
    if seq_len > max_doc_length:
        raise ValueError(
            f"seq_len={seq_len} exceeds max_doc_length={max_doc_length}")
    if dim != pos_dim:
        raise ValueError(f"x last dim {dim} != pos_emd_dim {pos_dim}")

    # PyTorch type promotion: bf16 x + f32 table -> f32 output.
    out_dtype = jnp.result_type(x.dtype, pos_embedding.dtype)
    x_itemsize = jnp.dtype(x.dtype).itemsize
    out_itemsize = jnp.dtype(out_dtype).itemsize

    flat = seq_len * dim
    x2 = x.reshape(batch, flat)                                   # lane-dense slab
    pos2 = pos_embedding[:seq_len].astype(out_dtype).reshape(1, flat)

    target_bytes, vmem_cap = _hw_block_params()
    bb, fb = _choose_blocks(batch, flat, out_itemsize, target_bytes)

    x_blk = bb * fb * x_itemsize
    o_blk = bb * fb * out_itemsize
    pos_blk = fb * out_itemsize
    needed = 2 * (x_blk + o_blk) + 2 * pos_blk + _VMEM_HEADROOM
    vmem_limit = int(max(_VMEM_LIMIT_FLOOR, min(needed, vmem_cap)))

    if fb == flat:
        # ---- Common case: pos row is a single resident block (DMA'd once). ----
        grid = (pl.cdiv(batch, bb),)
        out2 = pl.pallas_call(
            _add_pos_kernel,
            out_shape=jax.ShapeDtypeStruct((batch, flat), out_dtype),
            grid_spec=pltpu.PrefetchScalarGridSpec(
                num_scalar_prefetch=0,
                grid=grid,
                in_specs=[
                    pl.BlockSpec((bb, flat), lambda r: (r, 0)),
                    # Constant block index -> fetched once, stays in VMEM.
                    pl.BlockSpec((1, flat), lambda r: (0, 0)),
                ],
                out_specs=pl.BlockSpec((bb, flat), lambda r: (r, 0)),
            ),
            compiler_params=pltpu.CompilerParams(
                dimension_semantics=("parallel",),
                vmem_limit_bytes=vmem_limit,
            ),
        )(x2, pos2)
    else:
        # ---- Huge rows: tile the lane axis; rows are the fast grid axis so the
        # pos block is only re-fetched when the F index changes. ----
        grid = (pl.cdiv(flat, fb), pl.cdiv(batch, bb))
        out2 = pl.pallas_call(
            _add_pos_kernel,
            out_shape=jax.ShapeDtypeStruct((batch, flat), out_dtype),
            grid_spec=pltpu.PrefetchScalarGridSpec(
                num_scalar_prefetch=0,
                grid=grid,
                in_specs=[
                    pl.BlockSpec((bb, fb), lambda f, r: (r, f)),
                    pl.BlockSpec((1, fb), lambda f, r: (0, f)),
                ],
                out_specs=pl.BlockSpec((bb, fb), lambda f, r: (r, f)),
            ),
            compiler_params=pltpu.CompilerParams(
                dimension_semantics=("parallel", "parallel"),
                vmem_limit_bytes=vmem_limit,
            ),
        )(x2, pos2)

    return out2.reshape(batch, seq_len, dim)


def init_position_embedding(key, max_doc_length, pos_emd_dim, dtype=jnp.float32):
    """xavier_normal_ on a (max_doc_length, pos_emd_dim) parameter."""
    std = math.sqrt(2.0 / (max_doc_length + pos_emd_dim))
    return std * jax.random.normal(key, (max_doc_length, pos_emd_dim), dtype=dtype)


if __name__ == "__main__":
    key = jax.random.PRNGKey(0)
    k_param, k_x, k_param2, k_x2 = jax.random.split(key, 4)

    # ---- Main check: 128-multiple flat (resident-pos fast path). ----
    max_doc_length = 16
    pos_emd_dim = 32
    batch = 2
    seq_len = 8

    pos_embedding = init_position_embedding(k_param, max_doc_length, pos_emd_dim)
    x = jax.random.normal(k_x, (batch, seq_len, pos_emd_dim), dtype=jnp.float32)
    mask = jnp.ones((batch, seq_len), dtype=jnp.float32)  # unused, parity only

    out = document_position_encode(x, pos_embedding, mask)
    out = jax.block_until_ready(out)
    ref = x + pos_embedding[:seq_len][None, :, :]
    assert out.shape == (batch, seq_len, pos_emd_dim)
    assert out.dtype == ref.dtype
    assert jnp.allclose(out, ref, atol=1e-6), "mismatch vs reference (128-mult path)"

    # ---- Secondary check: seq_len*dim NOT a multiple of 128 (old 3-D fallback,
    # now flattened with a full-extent lane block). ----
    pos_embedding2 = init_position_embedding(k_param2, 12, 24)
    x2 = jax.random.normal(k_x2, (3, 5, 24), dtype=jnp.float32)
    out2 = jax.block_until_ready(document_position_encode(x2, pos_embedding2))
    ref2 = x2 + pos_embedding2[:5][None, :, :]
    assert jnp.allclose(out2, ref2, atol=1e-6), "mismatch vs reference (non-128 path)"

    print("KERNEL_OK")
</pallas_src>

<mosaic_0001>
module attributes {stable_mosaic.version = 11 : i64} {
  func.func @_add_pos_kernel(%arg0: i32, %arg1: memref<2x256xf32, #tpu.memory_space<vmem>>, %arg2: memref<1x256xf32, #tpu.memory_space<vmem>>, %arg3: memref<2x256xf32, #tpu.memory_space<vmem>>) attributes {dimension_semantics = [#tpu.dimension_semantics<parallel>], iteration_bounds = array<i64: 1>, scalar_prefetch = 0 : i64, scratch_operands = 0 : i64, tpu.core_type = #tpu.core_type<tc>, window_params = [{transform_indices = @transform_0, window_bounds = array<i64: 2, 256>}, {pipeline_mode = #tpu.pipeline_mode<synchronous>, transform_indices = @transform_1, window_bounds = array<i64: 1, 256>}, {transform_indices = @transform_2, window_bounds = array<i64: 2, 256>}]} {
    %c0 = arith.constant 0 : index
    %c0_0 = arith.constant 0 : index
    %0 = vector.load %arg1[%c0, %c0_0] : memref<2x256xf32, #tpu.memory_space<vmem>>, vector<2x256xf32>
    %c0_1 = arith.constant 0 : index
    %c0_2 = arith.constant 0 : index
    %1 = vector.load %arg2[%c0_1, %c0_2] : memref<1x256xf32, #tpu.memory_space<vmem>>, vector<1x256xf32>
    %2 = vector.broadcast %1 : vector<1x256xf32> to vector<2x256xf32>
    %3 = arith.addf %0, %2 : vector<2x256xf32>
    %c0_3 = arith.constant 0 : index
    %c0_4 = arith.constant 0 : index
    %4 = vector.load %arg3[%c0_3, %c0_4] : memref<2x256xf32, #tpu.memory_space<vmem>>, vector<2x256xf32>
    tpu.vector_store %arg3[%c0_3, %c0_4], %3 {strides = array<i32>} : memref<2x256xf32, #tpu.memory_space<vmem>>, vector<2x256xf32>,
    return
  }
  func.func @transform_0(%arg0: i32) -> (i32, i32) {
    %c0_i32 = arith.constant 0 : i32
    %c0_i32_0 = arith.constant 0 : i32
    return %arg0, %c0_i32 : i32, i32
  }
  func.func @transform_1(%arg0: i32) -> (i32, i32) {
    %c0_i32 = arith.constant 0 : i32
    %c0_i32_0 = arith.constant 0 : i32
    %c0_i32_1 = arith.constant 0 : i32
    return %c0_i32, %c0_i32_0 : i32, i32
  }
  func.func @transform_2(%arg0: i32) -> (i32, i32) {
    %c0_i32 = arith.constant 0 : i32
    %c0_i32_0 = arith.constant 0 : i32
    return %arg0, %c0_i32 : i32, i32
  }
}

</mosaic_0001>

<bundles_post_ra>
// kernel: tpu_custom_call.1
= control target key start
LH: loop header
LB: loop body
LE: loop exit
PB: predicated region body
PF: predicated region fallthrough
CT: control target
= control target key end

     0   :  { %7 = vsyncpa [#allocation3], 0  ;;  %s172_s0 = inlined_call_operand.hbm [shape: f32[2,256], index: 0, kind: input, shape index: {}]   ;;  %s173_s1 = inlined_call_operand.hbm [shape: f32[1,256], index: 1, kind: input, shape index: {}]   ;;  %s174_s2 = inlined_call_operand.hbm [shape: f32[2,256], index: 2, kind: output, shape index: {}]  }
   0x1   :  { %8 = vsyncpa [#allocation6], 0 }
   0x2   :  { %9 = vsyncpa [#allocation4], 0  ;;  %s144_s9 = smov [#allocation2]   ;;  %s145_s11 = smov [#allocation5]  }
   0x3   :  { %s16_s10 = sshll.u32 %s144_s9, 4  ;;  %s26_s12 = sshll.u32 %s145_s11, 4  ;;  %s17_s10 = int_to_ptr.vmem [resolvable:$true] %s16_s10  ;;  %s27_s12 = int_to_ptr.vmem [resolvable:$true] %s26_s12 }
   0x4   :  { %s86_s13 = scalar_lea.vmem %s17_s10, 64  ;;  %p91_p1 = scmp.lt.s32.totalorder %s17_s10, %s17_s10 }
   0x5   :  { %p87_p0 = scmp.ne.s32.totalorder %s17_s10, %s86_s13  ;;  %p92_p2 = scmp.lt.s32.totalorder %s86_s13, %s86_s13 }
   0x7   :  { %p93_p3 = por %p92_p2, %p91_p1 }
   0x9   :  { %p94_p4 = pnand %p93_p3, %p87_p0 }
   0xb   :  { %97 = shalt.err (!%p94_p4)
}
   0xc   :  { %19 = dma.hbm_to_vmem [thread:$0]  %s172_s0, 64, %s17_s10, [#allocation3]  }
   0xd   :  { %s106_s16 = scalar_lea.vmem %s27_s12, 32  ;;  %p111_p6 = scmp.lt.s32.totalorder %s27_s12, %s27_s12 }
   0xe   :  { %p107_p5 = scmp.ne.s32.totalorder %s27_s12, %s106_s16  ;;  %p112_p7 = scmp.lt.s32.totalorder %s106_s16, %s106_s16 }
  0x10   :  { %p113_p8 = por %p112_p7, %p111_p6 }
  0x12   :  { %p114_p9 = pnand %p113_p8, %p107_p5 }
  0x14   :  { %117 = shalt.err (!%p114_p9)
}
  0x15   :  { %29 = dma.hbm_to_vmem [thread:$0]  %s173_s1, 32, %s27_s12, [#allocation6]  }
  0x16   :  { %138 = dma.done.wait [#allocation3], 64  }
  0x17   :  { %139 = vsyncadd [#allocation3], 4294967232 }
  0x18   :  { %140 = dma.done.wait [#allocation6], 32  }
  0x19   :  { %141 = vsyncadd [#allocation6], 4294967264  ;;  %v39_v0 = vlaneseq  ;;  %v146_v1 = vmov 1983009808   ;;  %v37_v7 = vld [vmem:[#allocation5] sm:$0x3] }
  0x1a   :  { %v49_v2 = vunpack.c.l.s4 %v146_v1  ;;  %v36_v12 = vld [vmem:[#allocation2] sm:$0xf]  ;;  %s147_s0 = smov [#allocation7]  }
  0x1b   :  { %v40_v3 = vshrl.u32 %v39_v0, 7  ;;  %s64_s19 = sshll.u32 %s147_s0, 4  ;;  %s65_s19 = int_to_ptr.vmem [resolvable:$true] %s64_s19 }
  0x1c   :  { %v50_v6 = vunpack.c.0.s8 %v49_v2  ;;  %s118_s1 = scalar_lea.vmem %s65_s19, 64  ;;  %p123_p11 = scmp.lt.s32.totalorder %s65_s19, %s65_s19 }
  0x1d   :  { %v41_v4 = vsub.s32 0, %v40_v3  ;;  %v45_v5 = vsub.s32 1, %v40_v3  ;;  %p119_p10 = scmp.ne.s32.totalorder %s65_s19, %s118_s1  ;;  %p124_p12 = scmp.lt.s32.totalorder %s118_s1, %s118_s1 }
  0x1e   :  { %v53_v10 = vsub.s32 %v50_v6, %v40_v3 }
  0x1f   :  { %v42_v8 = vrot.slane %v37_v7, %v41_v4  ;;  %v46_v9 = vrot.slane %v37_v7, %v45_v5  ;;  %p125_p13 = por %p124_p12, %p123_p11 }
  0x21   :  { %v47_v11 = vcombine.low %v42_v8, %v46_v9  ;;  %p126_p0 = pnand %p125_p13, %p119_p10 }
  0x23   :  { %v54_v13 = vrot.slane %v47_v11, %v53_v10 }
  0x25   :  { %v56_v14 = vadd.f32 %v54_v13, %v36_v12 }
  0x27   :  { %57 = vst [vmem:[#allocation7] sm:$0xf] %v56_v14 }
  0x28   :  { %129 = shalt.err (!%p126_p0)
}
  0x29   :  { %67 = dma.vmem_to_hbm [thread:$0]  %s65_s19, 64, %s174_s2, [#allocation4]  }
  0x2a   :  { %142 = dma.done.wait [#allocation4], 64  }
  0x2b   :  { %143 = vsyncadd [#allocation4], 4294967232 }
  0x2c   :  { %71 = vsyncpa [#allocation3], 1 }
  0x2d   :  { %72 = vsyncpa [#allocation6], 1 }
  0x2e   :  { %73 = vsyncpa [#allocation4], 1 }

</bundles_post_ra>
